<compile_context>
chip_gen: v6e
topology: v6e:2x2x1
jax: 0.10.0
libtpu: 0.0.40
codegen_flags: <defaults>
</compile_context>

<pallas_src>
import functools

import jax
import jax.numpy as jnp
import numpy as np
from jax.experimental import pallas as pl
from jax.experimental.pallas import tpu as pltpu


def _make_freqs(num_freqs=20, max_freq=10):
    # Matches: 2.0 ** np.linspace(0.0, max_freq, num_freqs).astype(np.single)
    return 2.0 ** np.linspace(0.0, float(max_freq), num=num_freqs).astype(np.float32)


def _round_up(v, m):
    return ((v + m - 1) // m) * m


def _embed_kernel(x_ref, fmat_ref, o_ref, *, c_in, n_sin):
    # x_ref:    (tile_n, C)      input rows (last grid block may be padded)
    # fmat_ref: (C, C_out)       fmat[c, j] nonzero only where lane j belongs to
    #                            channel c: 1.0 on identity lanes, freqs[k] on the
    #                            sin/cos lanes.  Phases therefore land directly at
    #                            their final output lane offsets.
    # o_ref:    (tile_n, C_out)  [x | sin(x*f) slab | cos(x*f) slab]
    x = x_ref[...].astype(jnp.float32)            # (tile_n, C)
    fm = fmat_ref[...]                            # (C, C_out), f32
    C = x.shape[1]

    # ph[n, j] = x[n, ch(j)] * fmat[ch(j), j]; the other C-1 terms are exact 0
    # multiplies/adds, so ph is bit-identical to the reference's x * freq
    # (and to x itself on the identity lanes, where fmat == 1.0).
    ph = x[:, 0:1] * fm[0:1, :]                   # (tile_n, C_out)
    for c in range(1, C):
        ph = ph + x[:, c:c + 1] * fm[c:c + 1, :]

    # One sin pass + one cos pass over the full (<=128-lane) slab, combined with
    # per-lane selects -> a single, lane-aligned full-block store.
    lane = jax.lax.broadcasted_iota(jnp.int32, ph.shape, 1)
    trig = jnp.where(lane < c_in + n_sin, jnp.sin(ph), jnp.cos(ph))
    out = jnp.where(lane < c_in, ph, trig) if c_in else trig
    o_ref[...] = out.astype(o_ref.dtype)


def _choose_tile(N, requested):
    # Multiple of 8 (sublane); capped at ceil(N/2) rounded up so the "parallel"
    # grid axis has >=2 steps and can shard across v7x's two TensorCores.
    t = int(requested)
    if N > 8:
        t = min(t, _round_up(-(-N // 2), 8))
    t = max(8, min(t, _round_up(N, 8)))
    return _round_up(t, 8)


def embedding_module_log(x, num_freqs=20, max_freq=10, include_in=True,
                         tile_n=2048, out_dtype=None):
    """x: (N, C) float32.  Returns (N, C * (2*num_freqs + include_in))."""
    N, C = x.shape
    out_dtype = x.dtype if out_dtype is None else out_dtype
    freqs = _make_freqs(num_freqs, max_freq)
    n_sin = num_freqs * C
    c_in = C if include_in else 0
    C_out = c_in + 2 * n_sin

    # Frequency matrix laid out to match the output lanes exactly.
    fmat = np.zeros((C, C_out), dtype=np.float32)
    if include_in:
        for c in range(C):
            fmat[c, c] = 1.0
    for k in range(num_freqs):
        for c in range(C):
            fmat[c, c_in + k * C + c] = freqs[k]
            fmat[c, c_in + n_sin + k * C + c] = freqs[k]
    fmat = jnp.asarray(fmat)

    tile_n = _choose_tile(N, tile_n)
    grid = (pl.cdiv(N, tile_n),)   # partial final block handled by Pallas masking

    kernel = functools.partial(_embed_kernel, c_in=c_in, n_sin=n_sin)

    cost = pl.CostEstimate(
        flops=2 * N * C * C_out,                       # broadcast-MAC + selects
        transcendentals=2 * N * C_out,                 # sin + cos over the slab
        bytes_accessed=(N * C * x.dtype.itemsize
                        + N * C_out * jnp.dtype(out_dtype).itemsize
                        + int(fmat.size) * 4),
    )

    return pl.pallas_call(
        kernel,
        out_shape=jax.ShapeDtypeStruct((N, C_out), out_dtype),
        grid=grid,
        in_specs=[
            pl.BlockSpec((tile_n, C), lambda i: (i, 0)),
            pl.BlockSpec((C, C_out), lambda i: (0, 0)),   # same block every step -> one DMA
        ],
        out_specs=pl.BlockSpec((tile_n, C_out), lambda i: (i, 0)),
        compiler_params=pltpu.CompilerParams(
            dimension_semantics=("parallel",),
            vmem_limit_bytes=32 * 1024 * 1024,
        ),
        cost_estimate=cost,
    )(x, fmat)


def _reference(x, num_freqs=20, max_freq=10, include_in=True):
    freqs = jnp.asarray(_make_freqs(num_freqs, max_freq))
    outs = [x] if include_in else []
    for f in freqs:
        outs.append(jnp.sin(x * f))
    for f in freqs:
        outs.append(jnp.cos(x * f))
    return jnp.concatenate(outs, axis=-1)


if __name__ == "__main__":
    key = jax.random.PRNGKey(0)
    # Small NeRF-style input: 64 points, 3 coordinate channels.
    x = jax.random.normal(key, (64, 3), dtype=jnp.float32)

    out = jax.block_until_ready(embedding_module_log(x, num_freqs=20, max_freq=10))
    ref = _reference(x)
    assert out.shape == (64, 3 * 41), out.shape
    np.testing.assert_allclose(np.asarray(out), np.asarray(ref), rtol=1e-5, atol=1e-5)

    # Ragged N: exercises the cdiv grid + partial-final-block masking path
    # (no pad, no output slice).
    x2 = jax.random.normal(jax.random.PRNGKey(1), (50, 3), dtype=jnp.float32)
    out2 = jax.block_until_ready(embedding_module_log(x2))
    assert out2.shape == (50, 3 * 41), out2.shape
    np.testing.assert_allclose(np.asarray(out2), np.asarray(_reference(x2)),
                               rtol=1e-5, atol=1e-5)

    print("KERNEL_OK")
</pallas_src>

<mosaic_0001>
module attributes {stable_mosaic.version = 11 : i64} {
  func.func @_embed_kernel(%arg0: i32, %arg1: memref<32x3xf32, #tpu.memory_space<vmem>>, %arg2: memref<3x123xf32, #tpu.memory_space<vmem>>, %arg3: memref<32x123xf32, #tpu.memory_space<vmem>>) attributes {dimension_semantics = [#tpu.dimension_semantics<parallel>], iteration_bounds = array<i64: 2>, scalar_prefetch = 0 : i64, scratch_operands = 0 : i64, tpu.core_type = #tpu.core_type<tc>, window_params = [{transform_indices = @transform_0, window_bounds = array<i64: 32, 3>}, {pipeline_mode = #tpu.pipeline_mode<synchronous>, transform_indices = @transform_1, window_bounds = array<i64: 3, 123>}, {transform_indices = @transform_2, window_bounds = array<i64: 32, 123>}]} {
    %c0 = arith.constant 0 : index
    %c0_0 = arith.constant 0 : index
    %0 = vector.load %arg1[%c0, %c0_0] : memref<32x3xf32, #tpu.memory_space<vmem>>, vector<32x3xf32>
    %c0_1 = arith.constant 0 : index
    %c0_2 = arith.constant 0 : index
    %1 = vector.load %arg2[%c0_1, %c0_2] : memref<3x123xf32, #tpu.memory_space<vmem>>, vector<3x123xf32>
    %2 = vector.extract_strided_slice %0 {offsets = [0, 0], sizes = [32, 1], strides = [1, 1]} : vector<32x3xf32> to vector<32x1xf32>
    %3 = vector.extract_strided_slice %1 {offsets = [0, 0], sizes = [1, 123], strides = [1, 1]} : vector<3x123xf32> to vector<1x123xf32>
    %4 = vector.broadcast %2 : vector<32x1xf32> to vector<32x123xf32>
    %5 = vector.broadcast %3 : vector<1x123xf32> to vector<32x123xf32>
    %6 = arith.mulf %4, %5 : vector<32x123xf32>
    %7 = vector.extract_strided_slice %0 {offsets = [0, 1], sizes = [32, 1], strides = [1, 1]} : vector<32x3xf32> to vector<32x1xf32>
    %8 = vector.extract_strided_slice %1 {offsets = [1, 0], sizes = [1, 123], strides = [1, 1]} : vector<3x123xf32> to vector<1x123xf32>
    %9 = vector.broadcast %7 : vector<32x1xf32> to vector<32x123xf32>
    %10 = vector.broadcast %8 : vector<1x123xf32> to vector<32x123xf32>
    %11 = arith.mulf %9, %10 : vector<32x123xf32>
    %12 = arith.addf %6, %11 : vector<32x123xf32>
    %13 = vector.extract_strided_slice %0 {offsets = [0, 2], sizes = [32, 1], strides = [1, 1]} : vector<32x3xf32> to vector<32x1xf32>
    %14 = vector.extract_strided_slice %1 {offsets = [2, 0], sizes = [1, 123], strides = [1, 1]} : vector<3x123xf32> to vector<1x123xf32>
    %15 = vector.broadcast %13 : vector<32x1xf32> to vector<32x123xf32>
    %16 = vector.broadcast %14 : vector<1x123xf32> to vector<32x123xf32>
    %17 = arith.mulf %15, %16 : vector<32x123xf32>
    %18 = arith.addf %12, %17 : vector<32x123xf32>
    %19 = tpu.iota {dimensions = array<i32: 1>} : vector<32x123xi32>
    %c63_i32 = arith.constant 63 : i32
    %20 = vector.broadcast %c63_i32 : i32 to vector<32x123xi32>
    %21 = arith.cmpi slt, %19, %20 : vector<32x123xi32>
    %22 = math.sin %18 : vector<32x123xf32>
    %23 = math.cos %18 : vector<32x123xf32>
    %24 = arith.select %21, %22, %23 : vector<32x123xi1>, vector<32x123xf32>
    %c3_i32 = arith.constant 3 : i32
    %25 = vector.broadcast %c3_i32 : i32 to vector<32x123xi32>
    %26 = arith.cmpi slt, %19, %25 : vector<32x123xi32>
    %27 = arith.select %26, %18, %24 : vector<32x123xi1>, vector<32x123xf32>
    %c0_3 = arith.constant 0 : index
    %c0_4 = arith.constant 0 : index
    %28 = vector.load %arg3[%c0_3, %c0_4] : memref<32x123xf32, #tpu.memory_space<vmem>>, vector<32x123xf32>
    tpu.vector_store %arg3[%c0_3, %c0_4], %27 {strides = array<i32>} : memref<32x123xf32, #tpu.memory_space<vmem>>, vector<32x123xf32>,
    return
  }
  func.func @transform_0(%arg0: i32) -> (i32, i32) {
    %c0_i32 = arith.constant 0 : i32
    %c0_i32_0 = arith.constant 0 : i32
    return %arg0, %c0_i32 : i32, i32
  }
  func.func @transform_1(%arg0: i32) -> (i32, i32) {
    %c0_i32 = arith.constant 0 : i32
    %c0_i32_0 = arith.constant 0 : i32
    %c0_i32_1 = arith.constant 0 : i32
    return %c0_i32, %c0_i32_0 : i32, i32
  }
  func.func @transform_2(%arg0: i32) -> (i32, i32) {
    %c0_i32 = arith.constant 0 : i32
    %c0_i32_0 = arith.constant 0 : i32
    return %arg0, %c0_i32 : i32, i32
  }
}

</mosaic_0001>

<bundles_post_ra>
// kernel: tpu_custom_call.1
= control target key start
LH: loop header
LB: loop body
LE: loop exit
PB: predicated region body
PF: predicated region fallthrough
CT: control target
= control target key end

     0   :  { %7 = vsyncpa [#allocation3], 0  ;;  %s1828_s0 = inlined_call_operand.vmem [shape: f32[64,3], index: 0, kind: input, shape index: {}]   ;;  %s1829_s1 = inlined_call_operand.vmem [shape: f32[3,123], index: 1, kind: input, shape index: {}]   ;;  %s1830_s2 = inlined_call_operand.hbm [shape: f32[64,123], index: 2, kind: output, shape index: {}]  }
   0x1   :  { %9 = vsyncpa [#allocation3 + $0x1], 0  ;;  %s1377_s9 = smov 0   ;;  %s1379_s10 = smov 0  }
   0x2   :  { %s1381_s11 = smov 0   ;;  %s1383_s12 = smov 0  }
   0x3 LB: > { %s1398_s13 = sadd.s32 4294967295, %s1348_s12   ;;  %s1155_s14 = sadd.s32 4294967294, %s1348_s12   ;;  %s1348_s12 = sphi %s1383_s12, %s1840_s12   ;;  %s1344_s11 = sphi %s1381_s11, %s1839_s11   ;;  %s1340_s10 = sphi %s1379_s10, %s1838_s10   ;;  %s1336_s9 = sphi %s1377_s9, %s1837_s9  }
   0x4   : > { %s1402_s15 = sadd.s32 1, %s1348_s12   ;;  %s69_s16 = sadd.s32 1, %s1344_s11 }
   0x5   : > { %s66_s17 = ssub.s32 %s1348_s12, %s1402_s15  ;;  %p79_p0 = scmp.ne.s32.totalorder %s1344_s11, %s1340_s10 }
   0x6   : > { %p67_p1 = scmp.eq.s32.totalorder %s66_s17, 0  ;;  %p80_p2 = scmp.eq.s32.totalorder %s1398_s13, 1 }
   0x7   : > { %p85_p3 = scmp.ne.s32.totalorder %s1340_s10, %s1336_s9  ;;  %p86_p4 = scmp.eq.s32.totalorder %s1155_s14, 1 }
   0x8   : > { %s1413_s18 = scalar_select %p67_p1, %s1344_s11, %s69_s16  }
   0x9   : > { %p1415_p5 = por %p80_p2, %p79_p0  ;;  %p1419_p6 = por %p86_p4, %p85_p3 }
   0xa   : > { %p1158_p7 = scmp.ge.s32.totalorder %s1348_s12, 1  ;;  %p116_p8 = scmp.lt.s32.totalorder %s1348_s12, 3 }
   0xc   : > { %p117_p9 = pnand %p1158_p7, %p116_p8 }
   0xd   : > { %s1160_s21 = sshll.u32 (!%p117_p9), %s1398_s13, 2  ;;  %s135_s28 = sand.u32 (!%p117_p9), 1, %s1340_s10  }
   0xe   : > { %120 = sbr.rel (%p117_p9) target bundleno = 332 (0x14c), region = 28  ;;  %p139_p10 = scmp.lt.s32.totalorder (!%p117_p9), %s1160_s21, 7 }
   0xf   : > { %s1159_s29 = sshll.u32 (!%p117_p9), %s135_s28, 5  ;;  %s1199_s3 = sshll.u32 (!%p117_p9), %s1398_s13, 9 }
  0x10   : > { %s1721_s30 = scalar_lea.vmem (!%p117_p9), [#allocation2], %s1159_s29  ;;  %s1775_s7 = scalar_lea.hbm (!%p117_p9), %s1830_s2, %s1199_s3 }
  0x11   : > { %s1093_s4 = sshll.u32 (!%p117_p9), %s1721_s30, 4  ;;  %s1788_s8 = scalar_lea.sflag (!%p117_p9), [#allocation3], %s135_s28  ;;  %s1777_s4 = int_to_ptr.vmem [resolvable:$true] %s1093_s4 }
  0x12   : > { %s1288_s13 = scalar_lea.vmem (!%p117_p9), %s1777_s4, 512  ;;  %s1359_s14 = smov (!%p117_p9), [#allocation2]  }
  0x13   : > { %v1350_v0 = vmov 0   ;;  %s1842_s21 = smov (!%p139_p10, %s1160_s21), 7  ;;  %v1351_v5 = vmov 1   ;;  %v1352_v6 = vmov 2   ;;  %v170_v7 = vlaneseq  ;;  %v149_v10 = vld [vmem:[%s1829_s1] sm:$0x7]  ;;  %p1289_p11 = scmp.ne.s32.totalorder %s1777_s4, %s1288_s13 }
  0x14   : > { %1267 = vset.pattern.permute.xlu1 %v1350_v0  ;;  %1266 = vset.pattern.permute.xlu0 %v1350_v0  ;;  %s1161_s22 = sshll.u32 %s1842_s21, 3  ;;  %s1292_s16 = sshll.u32 %s1359_s14, 4  ;;  %s1293_s16 = int_to_ptr.vmem [resolvable:$false] %s1292_s16 }
  0x15   : > { %s142_s25 = scalar_lea.vmem %s1828_s0, %s1161_s22  ;;  %v171_v8 = vshrl.u32 %v170_v7, 7  ;;  %p1290_p12 = pnand %p1289_p11, %p1415_p5 }
  0x16   : > { %v147_v1 = vld [vmem:[%s142_s25 + $0x10] sm:$0xff]  ;;  %v145_v2 = vld [vmem:[%s142_s25] sm:$0xff]  ;;  %v148_v3 = vld [vmem:[%s142_s25 + $0x18] sm:$0xff]  ;;  %s1294_s17 = scalar_lea.vmem %s1293_s16, 1024  ;;  %p1295_p0 = scmp.lt.s32.totalorder %s1777_s4, %s1293_s16 }
  0x17   : > { %162 = vperm.xlu1 %1267, %v147_v1   ;;  %152 = vperm.xlu0 %1266, %v145_v2   ;;  %v146_v4 = vld [vmem:[%s142_s25 + $0x8] sm:$0xff]  ;;  %v172_v9 = vsub.s32 0, %v171_v8  ;;  %v196_v17 = vsub.s32 1, %v171_v8  ;;  %v224_v20 = vsub.s32 2, %v171_v8  ;;  %p1291_p13 = pneg %p1290_p12  ;;  %p1296_p1 = scmp.lt.s32.totalorder %s1294_s17, %s1288_s13 }
  0x19   : > { %v173_v13 = vrot.slane %v149_v10, %v172_v9  ;;  %v197_v21 = vrot.slane %v149_v10, %v196_v17  ;;  %v225_v25 = vrot.slane %v149_v10, %v224_v20  ;;  %v1353_v9 = vmov 683565275   ;;  %p1297_p2 = por %p1296_p1, %p1295_p0 }
  0x1a   : > { %v1356_v17 = vmov 2102212464  }
  0x1b   : > { %167 = vperm.xlu1 %1267, %v148_v3   ;;  %157 = vperm.xlu0 %1266, %v146_v4   ;;  %p1298_p3 = pnand %p1297_p2, %p1291_p13 }
  0x1f   : > { %1269 = vset.pattern.permute.xlu1 %v1351_v5  ;;  %1268 = vset.pattern.permute.xlu0 %v1351_v5 }
  0x20   : > { %183 = vperm.xlu1 %1269, %v146_v4   ;;  %179 = vperm.xlu0 %1268, %v145_v2  }
  0x24   : > { %187 = vperm.xlu1 %1269, %v147_v1   ;;  %191 = vperm.xlu0 %1268, %v148_v3  }
  0x28   : > { %1270 = vset.pattern.permute.xlu1 %v1352_v6  ;;  %1271 = vset.pattern.permute.xlu0 %v1352_v6 }
  0x29   : > { %207 = vperm.xlu1 %1270, %v145_v2   ;;  %211 = vperm.xlu0 %1271, %v146_v4  }
  0x2d   : > { %215 = vperm.xlu1 %1270, %v147_v1  }
  0x31   : > { %219 = vperm.xlu1 %1270, %v148_v3  }
  0x92   : > { %v163_v11 = vpop.permute.xlu1 %162  ;;  %v153_v12 = vpop.permute.xlu0 %152 }
  0x93   : > { %v174_v26 = vmul.f32 %v173_v13, %v153_v12  ;;  %v176_v41 = vmul.f32 %v173_v13, %v163_v11 }
  0x96   : > { %v168_v14 = vpop.permute.xlu1 %167  ;;  %v158_v15 = vpop.permute.xlu0 %157 }
  0x97   : > { %v177_v16 = vmul.f32 %v173_v13, %v168_v14  ;;  %v175_v27 = vmul.f32 %v173_v13, %v158_v15  ;;  %v1354_v13 = vmov 2475754826   ;;  %v1355_v15 = vmov 2131351028  }
  0x9b   : > { %v184_v18 = vpop.permute.xlu1 %183  ;;  %v180_v19 = vpop.permute.xlu0 %179 }
  0x9c   : > { %v199_v28 = vmul.f32 %v197_v21, %v184_v18  ;;  %v198_v29 = vmul.f32 %v197_v21, %v180_v19  ;;  %v1357_v19 = vmov 920167782  }
  0x9e   : > { %v203_v33 = vadd.f32 %v199_v28, %v175_v27  ;;  %v202_v34 = vadd.f32 %v198_v29, %v174_v26  ;;  %v1358_v26 = vmov 1326507024  }
  0x9f   : > { %v188_v22 = vpop.permute.xlu1 %187  ;;  %v192_v23 = vpop.permute.xlu0 %191 }
  0xa0   : > { %v201_v24 = vmul.f32 %v197_v21, %v192_v23  ;;  %v200_v37 = vmul.f32 %v197_v21, %v188_v22 }
  0xa2   : > { %v205_v30 = vadd.f32 %v201_v24, %v177_v16  ;;  %v204_v46 = vadd.f32 %v200_v37, %v176_v41 }
  0xa4   : > { %v208_v31 = vpop.permute.xlu1 %207  ;;  %v212_v32 = vpop.permute.xlu0 %211 }
  0xa5   : > { %v226_v35 = vmul.f32 %v225_v25, %v208_v31  ;;  %v227_v36 = vmul.f32 %v225_v25, %v212_v32 }
  0xa7   : > { %v1433_v38 = vadd.f32 %v226_v35, %v202_v34  ;;  %v1435_v39 = vadd.f32 %v227_v36, %v203_v33 }
  0xa8   : > { %v216_v40 = vpop.permute.xlu1 %215 }
  0xa9   : > { %v237_v42 = vand.u32 2147483647, %v1433_v38  ;;  %v240_v43 = vand.u32 2139095040, %v1433_v38  ;;  %v341_v44 = vand.u32 2147483647, %v1435_v39  ;;  %v344_v45 = vand.u32 2139095040, %v1435_v39 }
  0xaa   : > { %v228_v48 = vmul.f32 %v225_v25, %v216_v40  ;;  %vm239_vm13 = vcmp.lt.s32.totalorder %v1433_v38, 0 }
  0xab   : > { %v241_v47 = vshrl.u32 %v240_v43, 23  ;;  %v244_v49 = vand.u32 8388607, %v237_v42  ;;  %v345_v50 = vshrl.u32 %v344_v45, 23  ;;  %v348_v51 = vand.u32 8388607, %v341_v44 }
  0xac   : > { %v220_v52 = vpop.permute.xlu1 %219  ;;  %v1445_v54 = vadd.f32 %v228_v48, %v204_v46 }
  0xad   : > { %v1162_v53 = vadd.s32 4294967169, %v241_v47  ;;  %v229_v55 = vmul.f32 %v225_v25, %v220_v52  ;;  %v1166_v56 = vadd.s32 4294967169, %v345_v50  ;;  %v245_v58 = vor.u32 8388608, %v244_v49 }
  0xae   : > { %v349_v59 = vor.u32 8388608, %v348_v51  ;;  %v448_v61 = vand.u32 2139095040, %v1445_v54 }
  0xaf   : > { %v247_v57 = vadd.s32 1, %v1162_v53  ;;  %v351_v60 = vadd.s32 1, %v1166_v56  ;;  %v1448_v62 = vadd.f32 %v229_v55, %v205_v30  ;;  %v1450_v4 = vshll.u32 %v245_v58, 8 }
  0xb0   : > { %v449_v0 = vshrl.u32 %v448_v61, 23  ;;  %v1454_v6 = vshll.u32 %v349_v59, 8 }
  0xb1   : > { %vm248_vm0 = vcmp.gt.s32.totalorder %v247_v57, 0  ;;  %vm352_vm1 = vcmp.gt.s32.totalorder %v351_v60, 0 }
  0xb2   : > { %v249_v63 = vsel %vm248_vm0, %v247_v57, 0  ;;  %v353_v3 = vsel %vm352_vm1, %v351_v60, 0  ;;  %v1457_v12 = vadd.s32 4294967169, %v449_v0  ;;  %vm1561_vm0 = vcmp.le.f32.partialorder %v237_v42, 0.7853982 }
  0xb3   : > { %v250_v1 = vshrl.u32 %v249_v63, 5  ;;  %v251_v2 = vand.u32 31, %v249_v63  ;;  %v1452_v5 = vshrl.u32 %v353_v3, 5  ;;  %v355_v11 = vand.u32 31, %v353_v3 }
  0xb5   : > { %v252_v8 = vsub.s32 32, %v251_v2  ;;  %v254_v10 = vshll.u32 %v1353_v9, %v251_v2  ;;  %v257_v14 = vshll.u32 %v1354_v13, %v251_v2  ;;  %v260_v16 = vshll.u32 %v1355_v15, %v251_v2 }
  0xb6   : > { %v263_v18 = vshll.u32 %v1356_v17, %v251_v2  ;;  %v266_v20 = vshll.u32 %v1357_v19, %v251_v2  ;;  %vm269_vm2 = vcmp.lt.s32.totalorder %v250_v1, 1  ;;  %vm270_vm3 = vcmp.lt.s32.totalorder %v250_v1, 2 }
  0xb7   : > { %v255_v21 = vshrl.u32 %v1354_v13, %v252_v8  ;;  %v258_v22 = vshrl.u32 %v1355_v15, %v252_v8  ;;  %v261_v23 = vshrl.u32 %v1356_v17, %v252_v8  ;;  %v253_v24 = vshrl.u32 %v1353_v9, %v252_v8 }
  0xb8   : > { %v264_v25 = vshrl.u32 %v1357_v19, %v252_v8  ;;  %v267_v27 = vshrl.u32 %v1358_v26, %v252_v8  ;;  %v356_v31 = vsub.s32 32, %v355_v11  ;;  %vm271_vm4 = vcmp.lt.s32.totalorder %v250_v1, 3 }
  0xb9   : > { %v256_v28 = vor.u32 %v255_v21, %v254_v10  ;;  %v259_v29 = vor.u32 %v258_v22, %v257_v14  ;;  %v262_v30 = vor.u32 %v261_v23, %v260_v16  ;;  %vm272_vm5 = vcmp.lt.s32.totalorder %v250_v1, 4 }
  0xba   : > { %v265_v32 = vor.u32 %v264_v25, %v263_v18  ;;  %v268_v33 = vor.u32 %v267_v27, %v266_v20  ;;  %v358_v45 = vshll.u32 %v1353_v9, %v355_v11  ;;  %v359_v48 = vshrl.u32 %v1354_v13, %v356_v31 }
  0xbb   : > { %v273_v34 = vsel %vm269_vm2, %v253_v24, %v256_v28  ;;  %v274_v35 = vsel %vm272_vm5, %v262_v30, 2102212464  ;;  %v277_v36 = vsel %vm269_vm2, %v256_v28, %v259_v29  ;;  %v281_v37 = vsel %vm269_vm2, %v259_v29, %v262_v30 }
  0xbc   : > { %v275_v40 = vsel %vm271_vm4, %v259_v29, %v274_v35  ;;  %v278_v41 = vsel %vm272_vm5, %v265_v32, 920167782  ;;  %v282_v43 = vsel %vm272_vm5, %v268_v33, 1326507024  ;;  %v361_v49 = vshll.u32 %v1354_v13, %v355_v11 }
  0xbd   : > { %v279_v46 = vsel %vm271_vm4, %v262_v30, %v278_v41  ;;  %v283_v47 = vsel %vm271_vm4, %v265_v32, %v282_v43  ;;  %v276_v50 = vsel %vm270_vm3, %v273_v34, %v275_v40  ;;  %v362_v53 = vshrl.u32 %v1355_v15, %v356_v31 }
  0xbe   : > { %v280_v51 = vsel %vm270_vm3, %v277_v36, %v279_v46  ;;  %v284_v52 = vsel %vm270_vm3, %v281_v37, %v283_v47  ;;  %v360_v59 = vor.u32 %v359_v48, %v358_v45  ;;  %v364_v61 = vshll.u32 %v1355_v15, %v355_v11 }
  0xbf   : > { %v1480_v55 = vmul.u32.u64.low %v1450_v4, %v284_v52  ;;  %v1481_v56 = vmul.u32.u64.high %v1450_v4, %v284_v52, %v1480_v55  ;;  %v1484_v57 = vmul.u32.u64.low %v1450_v4, %v280_v51  ;;  %v1485_v58 = vmul.u32.u64.high %v1450_v4, %v280_v51, %v1484_v57 }
  0xc0   : > { %v363_v60 = vor.u32 %v362_v53, %v361_v49  ;;  %v365_v63 = vshrl.u32 %v1356_v17, %v356_v31  ;;  %v357_v0 = vshrl.u32 %v1353_v9, %v356_v31  ;;  %v367_v1 = vshll.u32 %v1356_v17, %v355_v11 }
  0xc1   : > { %v368_v2 = vshrl.u32 %v1357_v19, %v356_v31  ;;  %v371_v3 = vshrl.u32 %v1358_v26, %v356_v31  ;;  %v292_v8 = vmul.u32 %v1450_v4, %v276_v50  ;;  %v370_v14 = vshll.u32 %v1357_v19, %v355_v11 }
  0xc2   : > { %v366_v10 = vor.u32 %v365_v63, %v364_v61  ;;  %vm373_vm6 = vcmp.lt.s32.totalorder %v1452_v5, 1  ;;  %vm294_vm7 = vc.u32 %v1481_v56, %v1484_v57  ;;  %v295_v16 = vadd.s32 1, %v1485_v58 }
  0xc3   : > { %v369_v18 = vor.u32 %v368_v2, %v367_v1  ;;  %vm374_vm8 = vcmp.lt.s32.totalorder %v1452_v5, 2  ;;  %v372_v20 = vor.u32 %v371_v3, %v370_v14  ;;  %vm375_vm9 = vcmp.lt.s32.totalorder %v1452_v5, 3 }
  0xc4   : > { %vm376_vm10 = vcmp.lt.s32.totalorder %v1452_v5, 4  ;;  %v381_v21 = vsel %vm373_vm6, %v360_v59, %v363_v60  ;;  %v296_v4 = vsel %vm294_vm7, %v295_v16, %v1485_v58  ;;  %v385_v23 = vsel %vm373_vm6, %v363_v60, %v366_v10 }
  0xc5   : > { %v378_v22 = vsel %vm376_vm10, %v366_v10, 2102212464  ;;  %v382_v11 = vsel %vm376_vm10, %v369_v18, 920167782  ;;  %v297_v24 = vadd.s32 %v296_v4, %v292_v8  ;;  %v377_v25 = vsel %vm373_vm6, %v357_v0, %v360_v59 }
  0xc6   : > { %v383_v27 = vsel %vm375_vm9, %v366_v10, %v382_v11  ;;  %v386_v28 = vsel %vm376_vm10, %v372_v20, 1326507024  ;;  %v379_v29 = vsel %vm375_vm9, %v363_v60, %v378_v22  ;;  %v455_v32 = vadd.s32 1, %v1457_v12 }
  0xc7   : > { %v384_v30 = vsel %vm374_vm8, %v381_v21, %v383_v27  ;;  %v387_v31 = vsel %vm375_vm9, %v369_v18, %v386_v28  ;;  %v298_v33 = vadd.s32 536870912, %v297_v24  ;;  %v445_v41 = vand.u32 2147483647, %v1445_v54 }
  0xc8   : > { %v388_v34 = vsel %vm374_vm8, %v385_v23, %v387_v31  ;;  %v1510_v35 = vmul.u32.u64.low %v1454_v6, %v384_v30  ;;  %v1511_v36 = vmul.u32.u64.high %v1454_v6, %v384_v30, %v1510_v35  ;;  %vm456_vm11 = vcmp.gt.s32.totalorder %v455_v32, 0 }
  0xc9   : > { %v1514_v37 = vmul.u32.u64.low %v1454_v6, %v388_v34  ;;  %v1515_v40 = vmul.u32.u64.high %v1454_v6, %v388_v34, %v1514_v37  ;;  %v299_v43 = vshrl.u32 %v298_v33, 30  ;;  %v380_v45 = vsel %vm374_vm8, %v377_v25, %v379_v29 }
  0xca   : > { %v457_v12 = vsel %vm456_vm11, %v455_v32, 0  ;;  %v399_v47 = vadd.s32 1, %v1511_v36  ;;  %v396_v49 = vmul.u32 %v1454_v6, %v380_v45  ;;  %v452_v50 = vand.u32 8388607, %v445_v41 }
  0xcb   : > { %v300_v46 = vshll.u32 %v299_v43, 30  ;;  %v459_v48 = vand.u32 31, %v457_v12  ;;  %vm398_vm12 = vc.u32 %v1515_v40, %v1510_v35  ;;  %v1527_v61 = vand.u32 127, %v170_v7 }
  0xcc   : > { %v400_v52 = vsel %vm398_vm12, %v399_v47, %v1511_v36  ;;  %v453_v59 = vor.u32 8388608, %v452_v50  ;;  %v323_v63 = vsub.s32 4, %v299_v43  ;;  %v293_v6 = vadd.s32 %v1484_v57, %v1481_v56 }
  0xcd   : > { %v301_v51 = vsub.s32 %v297_v24, %v300_v46  ;;  %v401_v53 = vadd.s32 %v400_v52, %v396_v49  ;;  %v460_v58 = vsub.s32 32, %v459_v48  ;;  %v1536_v8 = vshrl.u32 %v457_v12, 5 }
  0xce   : > { %v1538_v10 = vshll.u32 %v453_v59, 8  ;;  %v552_v7 = vand.u32 2139095040, %v1448_v62  ;;  %v462_v16 = vshll.u32 %v1353_v9, %v459_v48  ;;  %v324_v56 = vsel %vm239_vm13, %v323_v63, %v299_v43 }
  0xcf   : > { %v303_v55 = vsub.s32 0, %v301_v51  ;;  %v402_v5 = vadd.s32 536870912, %v401_v53  ;;  %v463_v2 = vshrl.u32 %v1354_v13, %v460_v58  ;;  %v466_v18 = vshrl.u32 %v1355_v15, %v460_v58 }
  0xd0   : > { %v469_v20 = vshrl.u32 %v1356_v17, %v460_v58  ;;  %v397_v57 = vadd.s32 %v1510_v35, %v1515_v40  ;;  %v472_v4 = vshrl.u32 %v1357_v19, %v460_v58  ;;  %v465_v11 = vshll.u32 %v1354_v13, %v459_v48 }
  0xd1   : > { %v1163_v60 = vmin.u32 %v303_v55, %v301_v51  ;;  %v1529_v0 = vshrl.u32 %v402_v5, 30  ;;  %v464_v22 = vor.u32 %v463_v2, %v462_v16  ;;  %v468_v23 = vshll.u32 %v1355_v15, %v459_v48 }
  0xd2   : > { %v471_v27 = vshll.u32 %v1356_v17, %v459_v48  ;;  %v475_v28 = vshrl.u32 %v1358_v26, %v460_v58  ;;  %v467_v31 = vor.u32 %v466_v18, %v465_v11  ;;  %v461_v34 = vshrl.u32 %v1353_v9, %v460_v58 }
  0xd3   : > { %v305_v1 = vclz %v1163_v60  ;;  %v404_v3 = vshll.u32 %v1529_v0, 30  ;;  %v470_v32 = vor.u32 %v469_v20, %v468_v23  ;;  %v474_v36 = vshll.u32 %v1357_v19, %v459_v48 }
  0xd4   : > { %v473_v35 = vor.u32 %v472_v4, %v471_v27  ;;  %vm477_vm15 = vcmp.lt.s32.totalorder %v1536_v8, 1  ;;  %vm478_vm1 = vcmp.lt.s32.totalorder %v1536_v8, 2  ;;  %vm480_vm2 = vcmp.lt.s32.totalorder %v1536_v8, 4 }
  0xd5   : > { %v1164_v14 = vadd.s32 4294967294, %v305_v1  ;;  %v1547_v21 = vsub.s32 %v401_v53, %v404_v3  ;;  %v476_v46 = vor.u32 %v475_v28, %v474_v36  ;;  %v482_v48 = vsel %vm480_vm2, %v470_v32, 2102212464 }
  0xd6   : > { %v485_v50 = vsel %vm477_vm15, %v464_v22, %v467_v31  ;;  %vm479_vm3 = vcmp.lt.s32.totalorder %v1536_v8, 3  ;;  %v481_v42 = vsel %vm477_vm15, %v461_v34, %v464_v22  ;;  %v486_v52 = vsel %vm480_vm2, %v473_v35, 920167782 }
  0xd7   : > { %vm1165_vm14 = vcmp.lt.s32.totalorder %v1164_v14, 0  ;;  %v407_v25 = vsub.s32 0, %v1547_v21  ;;  %v483_v55 = vsel %vm479_vm3, %v467_v31, %v482_v48  ;;  %v487_v58 = vsel %vm479_vm3, %v470_v32, %v486_v52 }
  0xd8   : > { %v308_v24 = vsel %vm1165_vm14, 0, %v1164_v14  ;;  %v489_v5 = vsel %vm477_vm15, %v467_v31, %v470_v32  ;;  %v488_v60 = vsel %vm478_vm1, %v485_v50, %v487_v58  ;;  %v490_v63 = vsel %vm480_vm2, %v476_v46, 1326507024 }
  0xd9   : > { %v309_v29 = vsub.s32 32, %v308_v24  ;;  %v313_v30 = vsub.s32 4294967266, %v308_v24  ;;  %v1167_v33 = vmin.u32 %v407_v25, %v1547_v21  ;;  %v310_v37 = vshll.u32 %v301_v51, %v308_v24 }
  0xda   : > { %v491_v2 = vsel %vm479_vm3, %v473_v35, %v490_v63  ;;  %v553_v3 = vshrl.u32 %v552_v7, 23  ;;  %v1590_v27 = vmul.u32.u64.low %v1538_v10, %v488_v60  ;;  %v1591_v28 = vmul.u32.u64.high %v1538_v10, %v488_v60, %v1590_v27 }
  0xdb   : > { %v311_v40 = vshrl.u32 %v293_v6, %v309_v29  ;;  %v314_v43 = vadd.s32 127, %v313_v30  ;;  %v409_v12 = vclz %v1167_v33  ;;  %v492_v20 = vsel %vm478_vm1, %v489_v5, %v491_v2 }
  0xdc   : > { %v1586_v22 = vmul.u32.u64.low %v1538_v10, %v492_v20  ;;  %v1587_v11 = vmul.u32.u64.high %v1538_v10, %v492_v20, %v1586_v22  ;;  %v1174_v23 = vadd.s32 4294967169, %v553_v3  ;;  %v427_v29 = vsub.s32 4, %v1529_v0 }
  0xdd   : > { %v312_v47 = vor.u32 %v311_v40, %v310_v37  ;;  %v315_v49 = vshll.u32 %v314_v43, 23  ;;  %v1168_v51 = vadd.s32 4294967294, %v409_v12  ;;  %vm343_vm5 = vcmp.lt.s32.totalorder %v1435_v39, 0 }
  0xde   : > { %v559_v30 = vadd.s32 1, %v1174_v23  ;;  %vm502_vm6 = vc.u32 %v1587_v11, %v1590_v27  ;;  %v549_v34 = vand.u32 2147483647, %v1448_v62  ;;  %v503_v37 = vadd.s32 1, %v1591_v28 }
  0xdf   : > { %v316_v53 = vor.u32 4788187, %v315_v49  ;;  %v319_v59 = vcvt.s32.f32 %v312_v47  ;;  %vm1169_vm4 = vcmp.lt.s32.totalorder %v1168_v51, 0  ;;  %v428_v8 = vsel %vm343_vm5, %v427_v29, %v1529_v0 }
  0xe0   : > { %v412_v1 = vsel %vm1169_vm4, 0, %v1168_v51  ;;  %vm560_vm7 = vcmp.gt.s32.totalorder %v559_v30, 0  ;;  %v504_v47 = vsel %vm502_vm6, %v503_v37, %v1591_v28  ;;  %vm1616_vm8 = vcmp.le.f32.partialorder %v341_v44, 0.7853982 }
  0xe1   : > { %v317_v6 = vand.u32 2147483647, %v316_v53  ;;  %v413_v14 = vsub.s32 32, %v412_v1  ;;  %v414_v16 = vshll.u32 %v1547_v21, %v412_v1  ;;  %v417_v18 = vsub.s32 4294967266, %v412_v1 }
  0xe2   : > { %v326_v21 = vsel %vm1561_vm0, 0, %v324_v56  ;;  %v561_v43 = vsel %vm560_vm7, %v559_v30, 0  ;;  %v1622_v48 = vand.u32 8388607, %v549_v34  ;;  %vm236_vm11 = vcmp.lt.s32.totalorder %v1527_v61, 63 }
  0xe3   : > { %v320_v4 = vmul.f32 %v319_v59, %v317_v6  ;;  %v415_v24 = vshrl.u32 %v397_v57, %v413_v14  ;;  %v418_v25 = vadd.s32 127, %v417_v18  ;;  %v484_v57 = vsel %vm478_vm1, %v481_v42, %v483_v55 }
  0xe4   : > { %v330_v35 = vadd.s32 3, %v326_v21  ;;  %v500_v40 = vmul.u32 %v1538_v10, %v484_v57  ;;  %v563_v0 = vand.u32 31, %v561_v43  ;;  %v1626_v10 = vand.u32 3, %v326_v21 }
  0xe5   : > { %v321_v7 = vxor.u32 2147483648, %v320_v4  ;;  %v416_v31 = vor.u32 %v415_v24, %v414_v16  ;;  %v419_v32 = vshll.u32 %v418_v25, 23  ;;  %v430_v42 = vsel %vm1616_vm8, 0, %v428_v8 }
  0xe6   : > { %v505_v49 = vadd.s32 %v504_v47, %v500_v40  ;;  %v1624_v50 = vand.u32 3, %v330_v35  ;;  %v1630_v53 = vshrl.u32 %v561_v43, 5  ;;  %v564_v44 = vsub.s32 32, %v563_v0 }
  0xe7   : > { %v322_v33 = vsel %vm239_vm13, %v321_v7, %v320_v4  ;;  %v420_v36 = vor.u32 4788187, %v419_v32  ;;  %v423_v46 = vcvt.s32.f32 %v416_v31  ;;  %v566_v55 = vshll.u32 %v1353_v9, %v563_v0 }
  0xe8   : > { %v325_v56 = vsel %vm1561_vm0, %v1433_v38, %v322_v33  ;;  %v506_v52 = vadd.s32 536870912, %v505_v49  ;;  %v569_v5 = vshll.u32 %v1354_v13, %v563_v0  ;;  %v572_v59 = vshll.u32 %v1355_v15, %v563_v0 }
  0xe9   : > { %1272 = vcosq.f32 %v325_v56  ;;  %v421_v12 = vand.u32 2147483647, %v420_v36  ;;  %v575_v60 = vshll.u32 %v1356_v17, %v563_v0  ;;  %v567_v6 = vshrl.u32 %v1354_v13, %v564_v44 }
  0xea   : > { %1274 = vsinq.f32 %v325_v56  ;;  %v1636_v63 = vshrl.u32 %v506_v52, 30  ;;  %v570_v1 = vshrl.u32 %v1355_v15, %v564_v44  ;;  %v578_v2 = vshll.u32 %v1357_v19, %v563_v0 }
  0xeb   : > { %v424_v51 = vmul.f32 %v423_v46, %v421_v12  ;;  %vm751_vm9 = vcmp.eq.s32.totalorder %v1626_v10, 2  ;;  %v573_v14 = vshrl.u32 %v1356_v17, %v564_v44  ;;  %v576_v16 = vshrl.u32 %v1357_v19, %v564_v44 }
  0xec   : > { %v579_v18 = vshrl.u32 %v1358_v26, %v564_v44  ;;  %vm748_vm10 = vcmp.eq.s32.totalorder %v1626_v10, 0  ;;  %v508_v15 = vshll.u32 %v1636_v63, 30  ;;  %v565_v20 = vshrl.u32 %v1353_v9, %v564_v44 }
  0xed   : > { %v425_v58 = vxor.u32 2147483648, %v424_v51  ;;  %v568_v4 = vor.u32 %v567_v6, %v566_v55  ;;  %vm332_vm12 = vcmp.lt.s32.totalorder %v1624_v50, 2  ;;  %vm747_vm13 = vcmp.lt.s32.totalorder %v1626_v10, 2 }
  0xee   : > { %v571_v17 = vor.u32 %v570_v1, %v569_v5  ;;  %v574_v19 = vor.u32 %v573_v14, %v572_v59  ;;  %v577_v26 = vor.u32 %v576_v16, %v575_v60  ;;  %vm1069_vm14 = vcmp.lt.s32.totalorder %v1527_v61, 3 }
  0xef   : > { %v426_v3 = vsel %vm343_vm5, %v425_v58, %v424_v51  ;;  %vm329_vm15 = vweird.f32 %v1433_v38  ;;  %v1658_v22 = vsub.s32 %v505_v49, %v508_v15  ;;  %v580_v9 = vor.u32 %v579_v18, %v578_v2 }
  0xf0   : > { %v429_v13 = vsel %vm1616_vm8, %v1435_v39, %v426_v3  ;;  %vm581_vm0 = vcmp.lt.s32.totalorder %v1630_v53, 1  ;;  %v434_v23 = vadd.s32 3, %v430_v42  ;;  %vm584_vm1 = vcmp.lt.s32.totalorder %v1630_v53, 4 }
  0xf1   : > { %1276 = vcosq.f32 %v429_v13  ;;  %v585_v24 = vsel %vm581_vm0, %v565_v20, %v568_v4  ;;  %v589_v25 = vsel %vm581_vm0, %v568_v4, %v571_v17  ;;  %v1662_v28 = vand.u32 3, %v430_v42 }
  0xf2   : > { %1278 = vsinq.f32 %v429_v13  ;;  %v511_v7 = vsub.s32 0, %v1658_v22  ;;  %vm583_vm2 = vcmp.lt.s32.totalorder %v1630_v53, 3  ;;  %v586_v21 = vsel %vm584_vm1, %v574_v19, 2102212464 }
  0xf3   : > { %vm333_vm3 = vcmp.eq.s32.totalorder %v1624_v50, 0  ;;  %v557_v30 = vor.u32 8388608, %v1622_v48  ;;  %v587_v31 = vsel %vm583_vm2, %v571_v17, %v586_v21  ;;  %v593_v32 = vsel %vm581_vm0, %v571_v17, %v574_v19 }
  0xf4   : > { %vm336_vm4 = vcmp.eq.s32.totalorder %v1624_v50, 2  ;;  %v1171_v56 = vmin.u32 %v511_v7, %v1658_v22  ;;  %vm582_vm5 = vcmp.lt.s32.totalorder %v1630_v53, 2  ;;  %v435_v36 = vand.u32 3, %v434_v23 }
  0xf5   : > { %v1678_v37 = vsel %vm582_vm5, %v585_v24, %v587_v31  ;;  %v590_v8 = vsel %vm584_vm1, %v577_v26, 920167782  ;;  %vm854_vm6 = vcmp.eq.s32.totalorder %v1662_v28, 2  ;;  %v594_v46 = vsel %vm584_vm1, %v580_v9, 1326507024 }
  0xf6   : > { %v1273_v29 = vpop.eup %1272  ;;  %v513_v12 = vclz %v1171_v56  ;;  %vm851_vm7 = vcmp.eq.s32.totalorder %v1662_v28, 0  ;;  %v597_v49 = vshll.u32 %v557_v30, 8  ;;  %vm1074_vm8 = vcmask 1006592  }
  0xf7   : > { %v1275_v57 = vpop.eup %1274  ;;  %v337_v33 = vxor.u32 2147483648, %v1273_v29  ;;  %v591_v42 = vsel %vm583_vm2, %v574_v19, %v590_v8  ;;  %v595_v50 = vsel %vm583_vm2, %v577_v26, %v594_v46  ;;  %v501_v2 = vadd.s32 %v1590_v27, %v1587_v11 }
  0xf8   : > { %v334_v35 = vxor.u32 2147483648, %v1275_v57  ;;  %v1172_v51 = vadd.s32 4294967294, %v513_v12  ;;  %v592_v55 = vsel %vm582_vm5, %v589_v25, %v591_v42  ;;  %v596_v58 = vsel %vm582_vm5, %v593_v32, %v595_v50 }
  0xf9   : > { %v338_v40 = vsel %vm336_vm4, %v337_v33, %v1275_v57  ;;  %v753_v43 = vsel %vm751_vm9, %v337_v33, %v1275_v57  ;;  %vm850_vm9 = vcmp.lt.s32.totalorder %v1662_v28, 2  ;;  %vm433_vm1 = vweird.f32 %v1435_v39 }
  0xfa   : > { %v335_v47 = vsel %vm333_vm3, %v1273_v29, %v334_v35  ;;  %v750_v45 = vsel %vm748_vm10, %v1273_v29, %v334_v35  ;;  %vm436_vm10 = vcmp.lt.s32.totalorder %v435_v36, 2  ;;  %v604_v30 = vmul.u32 %v597_v49, %v1678_v37 }
  0xfb   : > { %v339_v48 = vsel %vm332_vm12, %v335_v47, %v338_v40  ;;  %v754_v0 = vsel %vm747_vm13, %v750_v45, %v753_v43  ;;  %vm1173_vm12 = vcmp.lt.s32.totalorder %v1172_v51, 0  ;;  %vm437_vm13 = vcmp.eq.s32.totalorder %v435_v36, 0 }
  0xfc   : > { %v340_v52 = vsel %vm329_vm15, nan, %v339_v48  ;;  %v755_v44 = vsel %vm329_vm15, nan, %v754_v0  ;;  %v516_v59 = vsel %vm1173_vm12, 0, %v1172_v51  ;;  %vm440_vm15 = vcmp.eq.s32.totalorder %v435_v36, 2 }
  0xfd   : > { %v1065_v10 = vsel %vm236_vm11, %v340_v52, %v755_v44  ;;  %v1716_v60 = vmul.u32.u64.low %v597_v49, %v596_v58  ;;  %v1717_v6 = vmul.u32.u64.high %v597_v49, %v596_v58, %v1716_v60  ;;  %v517_v3 = vsub.s32 32, %v516_v59 }
  0xfe   : > { %v1070_v5 = vsel %vm1069_vm14, %v1433_v38, %v1065_v10  ;;  %v1277_v1 = vpop.eup %1276  ;;  %v521_v14 = vsub.s32 4294967266, %v516_v59  ;;  %v1725_v38 = vmul.u32.u64.low %v597_v49, %v592_v55  ;;  %v1726_v18 = vmul.u32.u64.high %v597_v49, %v592_v55, %v1725_v38 }
  0xff   : > { %1075 = vst.msk [vmem:[%s1721_s30] sm:$0xff] %vm1074_vm8, %v1070_v5  ;;  %v1279_v53 = vpop.eup %1278  ;;  %v441_v16 = vxor.u32 2147483648, %v1277_v1  ;;  %v518_v15 = vshll.u32 %v1658_v22, %v516_v59  ;;  %v519_v20 = vshrl.u32 %v501_v2, %v517_v3  ;;  %vm447_vm2 = vcmp.lt.s32.totalorder %v1445_v54, 0 }
 0x100   : > { %v438_v13 = vxor.u32 2147483648, %v1279_v53  ;;  %v522_v4 = vadd.s32 127, %v521_v14  ;;  %v605_v27 = vadd.s32 %v1725_v38, %v1717_v6  ;;  %vm606_vm0 = vc.u32 %v1717_v6, %v1725_v38 }
 0x101   : > { %v442_v17 = vsel %vm440_vm15, %v441_v16, %v1279_v53  ;;  %v856_v11 = vsel %vm854_vm6, %v441_v16, %v1279_v53  ;;  %v520_v9 = vor.u32 %v519_v20, %v518_v15  ;;  %v607_v25 = vadd.s32 1, %v1726_v18 }
 0x102   : > { %v439_v19 = vsel %vm437_vm13, %v1277_v1, %v438_v13  ;;  %v853_v26 = vsel %vm851_vm7, %v1277_v1, %v438_v13  ;;  %v523_v23 = vshll.u32 %v522_v4, 23  ;;  %v531_v37 = vsub.s32 4, %v1636_v63 }
 0x103   : > { %v443_v22 = vsel %vm436_vm10, %v439_v19, %v442_v17  ;;  %v857_v24 = vsel %vm850_vm9, %v853_v26, %v856_v11  ;;  %v608_v32 = vsel %vm606_vm0, %v607_v25, %v1726_v18  ;;  %v527_v56 = vcvt.s32.f32 %v520_v9 }
 0x104   : > { %v444_v7 = vsel %vm433_vm1, nan, %v443_v22  ;;  %v858_v21 = vsel %vm433_vm1, nan, %v857_v24  ;;  %v524_v29 = vor.u32 4788187, %v523_v23  ;;  %v609_v28 = vadd.s32 %v608_v32, %v604_v30 }
 0x105   : > { %v1066_v31 = vsel %vm236_vm11, %v444_v7, %v858_v21  ;;  %vm446_vm3 = vcmp.le.f32.partialorder %v445_v41, 0.7853982  ;;  %v532_v47 = vsel %vm447_vm2, %v531_v37, %v1636_v63  ;;  %vm537_vm13 = vweird.f32 %v1445_v54 }
 0x106   : > { %v1071_v57 = vsel %vm1069_vm14, %v1435_v39, %v1066_v31  ;;  %v525_v33 = vand.u32 2147483647, %v524_v29  ;;  %v610_v36 = vadd.s32 536870912, %v609_v28  ;;  %v534_v49 = vsel %vm446_vm3, 0, %v532_v47 }
 0x107   : > { %1076 = vst.msk [vmem:[%s1721_s30 + $0x8] sm:$0xff] %vm1074_vm8, %v1071_v57  ;;  %v538_v51 = vadd.s32 3, %v534_v49  ;;  %v952_v52 = vand.u32 3, %v534_v49  ;;  %vm551_vm15 = vcmp.lt.s32.totalorder %v1448_v62, 0  ;;  %vm550_vm0 = vcmp.le.f32.partialorder %v549_v34, 0.7853982 }
 0x108   : > { %v528_v35 = vmul.f32 %v527_v56, %v525_v33  ;;  %v611_v40 = vshrl.u32 %v610_v36, 30 }
 0x109   : > { %v539_v44 = vand.u32 3, %v538_v51  ;;  %vm954_vm5 = vcmp.eq.s32.totalorder %v952_v52, 0  ;;  %vm957_vm9 = vcmp.eq.s32.totalorder %v952_v52, 2  ;;  %vm953_vm12 = vcmp.lt.s32.totalorder %v952_v52, 2 }
 0x10a   : > { %v529_v8 = vxor.u32 2147483648, %v528_v35  ;;  %v612_v12 = vshll.u32 %v611_v40, 30  ;;  %v635_v9 = vsub.s32 4, %v611_v40 }
 0x10b   : > { %vm541_vm6 = vcmp.eq.s32.totalorder %v539_v44, 0  ;;  %vm544_vm7 = vcmp.eq.s32.totalorder %v539_v44, 2  ;;  %vm540_vm10 = vcmp.lt.s32.totalorder %v539_v44, 2 }
 0x10c   : > { %v530_v43 = vsel %vm447_vm2, %v529_v8, %v528_v35  ;;  %v613_v46 = vsub.s32 %v609_v28, %v612_v12  ;;  %v636_v24 = vsel %vm551_vm15, %v635_v9, %v611_v40 }
 0x10d   : > { %v533_v39 = vsel %vm446_vm3, %v1445_v54, %v530_v43  ;;  %v638_v25 = vsel %vm550_vm0, 0, %v636_v24 }
 0x10e   : > { %1280 = vcosq.f32 %v533_v39  ;;  %v615_v45 = vsub.s32 0, %v613_v46  ;;  %v1055_v21 = vand.u32 3, %v638_v25 }
 0x10f   : > { %1282 = vsinq.f32 %v533_v39 }
 0x110   : > { %v1175_v48 = vmin.u32 %v615_v45, %v613_v46  ;;  %vm1060_vm2 = vcmp.eq.s32.totalorder %v1055_v21, 2 }
 0x112   : > { %v617_v0 = vclz %v1175_v48 }
 0x114   : > { %v1176_v42 = vadd.s32 4294967294, %v617_v0 }
 0x116   : > { %vm1177_vm4 = vcmp.lt.s32.totalorder %v1176_v42, 0 }
 0x117   : > { %v620_v55 = vsel %vm1177_vm4, 0, %v1176_v42  ;;  %vm1057_vm4 = vcmp.eq.s32.totalorder %v1055_v21, 0 }
 0x118   : > { %v621_v41 = vsub.s32 32, %v620_v55  ;;  %v625_v50 = vsub.s32 4294967266, %v620_v55  ;;  %v622_v59 = vshll.u32 %v613_v46, %v620_v55 }
 0x11a   : > { %v623_v60 = vshrl.u32 %v605_v27, %v621_v41  ;;  %v626_v63 = vadd.s32 127, %v625_v50 }
 0x11b   : > { %v1281_v10 = vpop.eup %1280 }
 0x11c   : > { %v1283_v58 = vpop.eup %1282  ;;  %v545_v5 = vxor.u32 2147483648, %v1281_v10  ;;  %v624_v3 = vor.u32 %v623_v60, %v622_v59  ;;  %v627_v14 = vshll.u32 %v626_v63, 23 }
 0x11d   : > { %v542_v6 = vxor.u32 2147483648, %v1283_v58 }
 0x11e   : > { %v546_v1 = vsel %vm544_vm7, %v545_v5, %v1283_v58  ;;  %v959_v2 = vsel %vm957_vm9, %v545_v5, %v1283_v58  ;;  %v628_v13 = vor.u32 4788187, %v627_v14  ;;  %v631_v11 = vcvt.s32.f32 %v624_v3 }
 0x11f   : > { %v543_v53 = vsel %vm541_vm6, %v1281_v10, %v542_v6  ;;  %v956_v16 = vsel %vm954_vm5, %v1281_v10, %v542_v6  ;;  %vm1056_vm6 = vcmp.lt.s32.totalorder %v1055_v21, 2  ;;  %vm641_vm7 = vweird.f32 %v1448_v62 }
 0x120   : > { %v547_v38 = vsel %vm540_vm10, %v543_v53, %v546_v1  ;;  %v960_v18 = vsel %vm953_vm12, %v956_v16, %v959_v2  ;;  %v629_v17 = vand.u32 2147483647, %v628_v13 }
 0x121   : > { %v548_v15 = vsel %vm537_vm13, nan, %v547_v38  ;;  %v961_v20 = vsel %vm537_vm13, nan, %v960_v18 }
 0x122   : > { %v1067_v4 = vsel %vm236_vm11, %v548_v15, %v961_v20  ;;  %v632_v19 = vmul.f32 %v631_v11, %v629_v17 }
 0x123   : > { %v1072_v27 = vsel %vm1069_vm14, %v1445_v54, %v1067_v4  ;;  %v642_v54 = vadd.s32 3, %v638_v25 }
 0x124   : > { %1077 = vst.msk [vmem:[%s1721_s30 + $0x10] sm:$0xff] %vm1074_vm8, %v1072_v27  ;;  %v633_v26 = vxor.u32 2147483648, %v632_v19 }
 0x125   : > { %v643_v7 = vand.u32 3, %v642_v54 }
 0x126   : > { %v634_v23 = vsel %vm551_vm15, %v633_v26, %v632_v19 }
 0x127   : > { %v637_v22 = vsel %vm550_vm0, %v1448_v62, %v634_v23  ;;  %vm648_vm1 = vcmp.eq.s32.totalorder %v643_v7, 2  ;;  %vm645_vm3 = vcmp.eq.s32.totalorder %v643_v7, 0  ;;  %vm644_vm5 = vcmp.lt.s32.totalorder %v643_v7, 2 }
 0x128   : > { %1284 = vcosq.f32 %v637_v22 }
 0x129   : > { %1286 = vsinq.f32 %v637_v22 }
 0x135   : > { %v1285_v29 = vpop.eup %1284 }
 0x136   : > { %v1287_v30 = vpop.eup %1286  ;;  %v649_v31 = vxor.u32 2147483648, %v1285_v29 }
 0x137   : > { %v646_v32 = vxor.u32 2147483648, %v1287_v30 }
 0x138   : > { %v650_v34 = vsel %vm648_vm1, %v649_v31, %v1287_v30  ;;  %v1062_v57 = vsel %vm1060_vm2, %v649_v31, %v1287_v30 }
 0x139   : > { %v647_v33 = vsel %vm645_vm3, %v1285_v29, %v646_v32  ;;  %v1059_v56 = vsel %vm1057_vm4, %v1285_v29, %v646_v32 }
 0x13a   : > { %v651_v28 = vsel %vm644_vm5, %v647_v33, %v650_v34  ;;  %v1063_v35 = vsel %vm1056_vm6, %v1059_v56, %v1062_v57 }
 0x13b   : > { %v652_v36 = vsel %vm641_vm7, nan, %v651_v28  ;;  %v1064_v8 = vsel %vm641_vm7, nan, %v1063_v35 }
 0x13c   : > { %v1068_v40 = vsel %vm236_vm11, %v652_v36, %v1064_v8 }
 0x13d   : > { %v1073_v37 = vsel %vm1069_vm14, %v1448_v62, %v1068_v40 }
 0x13e   : > { %1078 = vst.msk [vmem:[%s1721_s30 + $0x18] sm:$0xff] %vm1074_vm8, %v1073_v37 }
 0x13f   : > { %1301 = shalt.err (!%p1298_p3)
}
 0x140   : > { %s1302_s21 = scalar_lea.hbm %s1775_s7, 512  ;;  %s1306_s24 = scalar_lea.hbm %s1830_s2, 1024 }
 0x141   : > { %p1303_p4 = scmp.ne.s32.totalorder %s1775_s7, %s1302_s21  ;;  %p1307_p9 = scmp.lt.s32.totalorder %s1775_s7, %s1830_s2 }
 0x142   : > { %p1308_p10 = scmp.lt.s32.totalorder %s1306_s24, %s1302_s21 }
 0x143   : > { %p1304_p7 = pnand %p1303_p4, %p1415_p5 }
 0x144   : > { %p1309_p11 = por %p1308_p10, %p1307_p9 }
 0x145   : > { %p1305_p8 = pneg %p1304_p7 }
 0x147   : > { %p1310_p12 = pnand %p1309_p11, %p1305_p8 }
 0x149   : > { %1313 = shalt.err (!%p1310_p12)
}
 0x14a   : > { %s1360_s27 = smov 128   ;;  %s1361_s28 = smov 8  }
 0x14b   : > { %1216 = dma.vmem_to_hbm [thread:$0]  (%p1415_p5), %s1777_s4, 512, %s1775_s7, %s1788_s8, %s1360_s27, %s1360_s27, %s1361_s28  }
 0x14c PF: > { %p1222_p13 = scmp.ge.s32.totalorder %s1348_s12, 2  ;;  %s1108_s29 = sand.u32 1, %s1336_s9  }
 0x14d   : > { %s1109_s30 = scalar_lea.sflag [#allocation3], %s1108_s29 }
 0x14e   : > { %p1219_p0 = pnand %p1222_p13, %p1419_p6 }
 0x150   : > { %p1220_p1 = pneg %p1219_p0 }
 0x152   : > { %1331 = dma.done.wait (%p1220_p1), %s1109_s30, 512  }
 0x153   : > { %1333 = vsyncadd (%p1220_p1), %s1109_s30, 4294966784  ;;  %p12_p2 = scmp.ge.s32.totalorder %s1402_s15, 4   ;;  %s1837_s9 = smov %s1340_s10 }
 0x154   : > { %s1838_s10 = smov %s1344_s11  ;;  %s1839_s11 = smov %s1413_s18 }
 0x155   : > { %s1840_s12 = smov %s1402_s15  ;;  %14 = sbr.rel (!%p12_p2) target bundleno = 3 (0x3), region = 63 }
 0x15a   :  { %1114 = vsyncpa [#allocation3], 1 }
 0x15b   :  { %1116 = vsyncpa [#allocation3 + $0x1], 1 }

</bundles_post_ra>
